<compile_context>
chip_gen: v7x
topology: tpu7x:2x2x1
jax: 0.10.0
libtpu: 0.0.40
codegen_flags: <defaults>
</compile_context>

<pallas_src>
import functools

import jax
import jax.numpy as jnp
from jax import lax
from jax.experimental import pallas as pl
from jax.experimental.pallas import tpu as pltpu


_LANE = 128
_ACC_BYTES = 32 * 1024        # running-sum accumulator cap (<= 8 vregs)
_UNROLL_THRESHOLD = 16        # python-unroll short chunk loops; fori_loop above


def _round_up(a, b):
    return (a + b - 1) // b * b


def _vmem_capacity_bytes():
    """Physical VMEM of the local TPU (fallback: assume the smallest, 64 MiB)."""
    try:
        info = pltpu.get_tpu_info()
        for attr in ("vmem_capacity_bytes", "vmem_size_bytes", "vmem_bytes"):
            v = getattr(info, attr, None)
            if v:
                return int(v)
    except Exception:
        pass
    return 64 * 1024 * 1024


def _tpu_sizes():
    """Per-generation tile / VMEM budgets.

    v5e / v6e (128 MiB VMEM): large streaming tiles, generous scoped limit.
    v7x (64 MiB VMEM): slightly smaller tiles, tighter scoped limit.
    """
    vmem = _vmem_capacity_bytes()
    if vmem >= 100 * 1024 * 1024:     # v5e / v6e
        return dict(tile_bytes=6 << 20, vmem_limit=96 << 20, fused_cap=20 << 20)
    return dict(tile_bytes=4 << 20, vmem_limit=48 << 20, fused_cap=10 << 20)


def _pick_chunk(C):
    """Lanes per accumulation step: keep the (C, chunk) running sum <= ~8 vregs."""
    chunk = (_ACC_BYTES // (C * 4)) // _LANE * _LANE
    return max(_LANE, min(512, chunk))


# ---------------------------------------------------------------------------
# In-kernel helpers
# ---------------------------------------------------------------------------

def _channel_sum(x_ref, *, chunk, valid):
    """f32 per-channel sum of lanes [0, valid) of a (1, C, W) VMEM ref -> (C, 1).

    `chunk` (multiple of 128) and `valid` are static.  Lanes >= valid (garbage
    from a partial last block) are never accumulated.
    """
    C = x_ref.shape[1]
    W = x_ref.shape[2]
    n_full = valid // chunk
    rem = valid - n_full * chunk
    # For large C the (C, chunk) accumulator would spill the vreg file; reduce
    # each chunk straight into a (C, 1) accumulator instead (XLU reduce per
    # chunk overlaps with the VPU adds / DMA).
    narrow = C * chunk * 4 > _ACC_BYTES

    def load(lo, width):
        return x_ref[0, :, pl.ds(lo, width)].astype(jnp.float32)

    def add(acc, data):
        if narrow:
            return acc + jnp.sum(data, axis=-1, keepdims=True)
        return acc + data

    acc = jnp.zeros((C, 1) if narrow else (C, chunk), jnp.float32)
    if n_full > 0:
        if n_full <= _UNROLL_THRESHOLD:
            for i in range(n_full):
                acc = add(acc, load(i * chunk, chunk))
        else:
            def body(i, a):
                lo = pl.multiple_of(i * chunk, chunk)
                return add(a, load(lo, chunk))
            acc = lax.fori_loop(0, n_full, body, acc, unroll=4)
    if not narrow:
        acc = jnp.sum(acc, axis=-1, keepdims=True)

    if rem > 0:
        lo = n_full * chunk
        if lo + chunk <= W:
            # Aligned full-chunk load; zero the tail lanes (may hold garbage).
            data = load(lo, chunk)
            lane = lax.broadcasted_iota(jnp.int32, (C, chunk), 1)
            data = jnp.where(lane < rem, data, 0.0)
        else:
            # Block equals the full array: stay in bounds with an exact slice.
            data = load(lo, rem)
        acc = acc + jnp.sum(data, axis=-1, keepdims=True)
    return acc


def _excite(y, w1_ref, b1_ref, w2t_ref, b2_ref):
    """SE excite MLP on the VPU (channels on sublanes, no MXU, no transposes).

    y: (C, 1) per-channel means -> (C, 1) sigmoid gate.
    """
    h = jnp.sum(y * w1_ref[...], axis=0, keepdims=True) + b1_ref[...]     # (1, Cr)
    h = jnp.where(h > 0, h, 0.01 * h)                                     # LeakyReLU
    z = jnp.sum(h * w2t_ref[...], axis=-1, keepdims=True) + b2_ref[...]   # (C, 1)
    return jax.nn.sigmoid(z)


def _scale_store(x_ref, o_ref, gate, *, chunk):
    """o[:] = x * gate (gate (C, 1) broadcast along lanes), chunked so code
    size and vreg pressure stay bounded for large tiles."""
    W = x_ref.shape[2]
    n_full = W // chunk
    rem = W - n_full * chunk

    def do(lo, width):
        o_ref[0, :, pl.ds(lo, width)] = (
            x_ref[0, :, pl.ds(lo, width)].astype(jnp.float32) * gate
        ).astype(o_ref.dtype)

    if n_full > 0:
        if n_full <= _UNROLL_THRESHOLD:
            for i in range(n_full):
                do(i * chunk, chunk)
        else:
            def body(i, carry):
                do(pl.multiple_of(i * chunk, chunk), chunk)
                return carry
            lax.fori_loop(0, n_full, body, 0, unroll=4)
    if rem > 0:
        do(n_full * chunk, rem)


# ---------------------------------------------------------------------------
# Kernels
# ---------------------------------------------------------------------------

def _fused_kernel(x_ref, w1_ref, b1_ref, w2t_ref, b2_ref, o_ref, *, inv_s, chunk):
    # One batch element per grid step: pool + excite + scale in a single pass
    # over the VMEM-resident (1, C, S) slab (HBM traffic: 1 read + 1 write).
    sums = _channel_sum(x_ref, chunk=chunk, valid=x_ref.shape[2])    # (C, 1)
    gate = _excite(sums * inv_s, w1_ref, b1_ref, w2t_ref, b2_ref)    # (C, 1)
    _scale_store(x_ref, o_ref, gate, chunk=chunk)


def _pool_excite_kernel(x_ref, w1_ref, b1_ref, w2t_ref, b2_ref, scale_ref,
                        *, inv_s, chunk, valid_last):
    # Accumulate per-channel sums across the spatial ('arbitrary') grid axis
    # into the VMEM-resident (1, C, 1) output block; on the last step fold in
    # the (masked) partial tile and run the excite MLP.
    s_idx = pl.program_id(1)
    n_s = pl.num_programs(1)
    tS = x_ref.shape[2]

    @pl.when(s_idx == 0)
    def _init():
        scale_ref[...] = jnp.zeros_like(scale_ref)

    if valid_last == tS:
        # S divides evenly: every tile is full.
        scale_ref[...] += _channel_sum(x_ref, chunk=chunk, valid=tS)[None]
    else:
        @pl.when(s_idx < n_s - 1)
        def _full():
            scale_ref[...] += _channel_sum(x_ref, chunk=chunk, valid=tS)[None]

    @pl.when(s_idx == n_s - 1)
    def _finalize():
        total = scale_ref[0]                                  # (C, 1)
        if valid_last != tS:
            # Partial last block: only accumulate the valid lanes.
            total = total + _channel_sum(x_ref, chunk=chunk, valid=valid_last)
        y = total * inv_s                                     # (C, 1) means
        scale_ref[...] = _excite(y, w1_ref, b1_ref, w2t_ref, b2_ref)[None]


def _scale_kernel(scale_ref, x_ref, o_ref, *, chunk):
    # Rescale one (1, C, tS) tile by the (1, C, 1) per-channel gate; Pallas'
    # masked partial-block store drops the out-of-range lanes of the last tile.
    _scale_store(x_ref, o_ref, scale_ref[0], chunk=chunk)


# ---------------------------------------------------------------------------
# Wrapper
# ---------------------------------------------------------------------------

def se_layer_3d(x, w1, b1, w2, b2, *, force_two_pass=False, tile_bytes=None):
    """SELayer3D forward.

    x:  (B, C, D, H, W), f32 or bf16.
    w1: (C, Cr), b1: (Cr,), w2: (Cr, C), b2: (C,)
        (transposed PyTorch Linear weights: math is y @ w1 + b1, h @ w2 + b2).
    """
    B, C, D, H, W = x.shape
    Cr = w1.shape[1]
    S = D * H * W
    itemsize = jnp.dtype(x.dtype).itemsize
    sizes = _tpu_sizes()
    if tile_bytes is None:
        tile_bytes = sizes["tile_bytes"]
    vmem_limit = sizes["vmem_limit"]
    chunk = _pick_chunk(C)

    # NCDHW -> (B, C, S) is a free (contiguous) reshape; no pad, no slice.
    x_flat = x.reshape(B, C, S)

    # Param layouts chosen so the excite MLP runs on the VPU with channels on
    # sublanes and no in-kernel transposes.
    w1_k = w1.astype(jnp.float32)                    # (C, Cr)
    b1_k = b1.reshape(1, Cr).astype(jnp.float32)     # (1, Cr)
    w2t_k = w2.T.astype(jnp.float32)                 # (C, Cr)
    b2_k = b2.reshape(C, 1).astype(jnp.float32)      # (C, 1)

    x_bytes = B * C * S * itemsize
    w_bytes = (2 * C * Cr + C + Cr) * 4
    scale_bytes = B * C * 4

    # ---- Fused single-pass path (per-batch slab fits VMEM budget) ----------
    slab_bytes = C * S * itemsize
    if slab_bytes <= sizes["fused_cap"] and not force_two_pass:
        out_flat = pl.pallas_call(
            functools.partial(_fused_kernel, inv_s=1.0 / S, chunk=chunk),
            out_shape=jax.ShapeDtypeStruct((B, C, S), x.dtype),
            grid_spec=pltpu.PrefetchScalarGridSpec(
                num_scalar_prefetch=0,
                grid=(B,),
                in_specs=[
                    pl.BlockSpec((1, C, S), lambda b: (b, 0, 0)),
                    pl.BlockSpec((C, Cr), lambda b: (0, 0)),
                    pl.BlockSpec((1, Cr), lambda b: (0, 0)),
                    pl.BlockSpec((C, Cr), lambda b: (0, 0)),
                    pl.BlockSpec((C, 1), lambda b: (0, 0)),
                ],
                out_specs=pl.BlockSpec((1, C, S), lambda b: (b, 0, 0)),
            ),
            compiler_params=pltpu.CompilerParams(
                dimension_semantics=("parallel",),
                vmem_limit_bytes=vmem_limit),
            cost_estimate=pl.CostEstimate(
                flops=2 * B * C * S + 4 * B * C * Cr,
                transcendentals=B * C,
                bytes_accessed=2 * x_bytes + w_bytes),
        )(x_flat, w1_k, b1_k, w2t_k, b2_k)
        return out_flat.reshape(B, C, D, H, W)

    # ---- Two-pass streaming path for large per-batch slabs -----------------
    lanes_cap = (tile_bytes // (C * itemsize)) // chunk * chunk
    tS = min(_round_up(S, chunk), max(chunk, lanes_cap))
    nS = pl.cdiv(S, tS)
    valid_last = S - (nS - 1) * tS

    # Pass 1: global average pool + excite MLP -> per-channel gate.
    scale = pl.pallas_call(
        functools.partial(_pool_excite_kernel, inv_s=1.0 / S, chunk=chunk,
                          valid_last=valid_last),
        out_shape=jax.ShapeDtypeStruct((B, C, 1), jnp.float32),
        grid_spec=pltpu.PrefetchScalarGridSpec(
            num_scalar_prefetch=0,
            grid=(B, nS),
            in_specs=[
                pl.BlockSpec((1, C, tS), lambda b, s: (b, 0, s)),
                pl.BlockSpec((C, Cr), lambda b, s: (0, 0)),
                pl.BlockSpec((1, Cr), lambda b, s: (0, 0)),
                pl.BlockSpec((C, Cr), lambda b, s: (0, 0)),
                pl.BlockSpec((C, 1), lambda b, s: (0, 0)),
            ],
            out_specs=pl.BlockSpec((1, C, 1), lambda b, s: (b, 0, 0)),
        ),
        compiler_params=pltpu.CompilerParams(
            dimension_semantics=("parallel", "arbitrary"),
            vmem_limit_bytes=vmem_limit),
        cost_estimate=pl.CostEstimate(
            flops=B * C * S + 4 * B * C * Cr,
            transcendentals=B * C,
            bytes_accessed=x_bytes + scale_bytes + w_bytes),
    )(x_flat, w1_k, b1_k, w2t_k, b2_k)
    # TODO(synk): for B == 1 on v7x, split the spatial reduction across a second
    # 'parallel' grid axis so both TensorCores contribute to pass 1.

    # Pass 2: broadcast the per-channel gate over the volume.
    out_flat = pl.pallas_call(
        functools.partial(_scale_kernel, chunk=chunk),
        out_shape=jax.ShapeDtypeStruct((B, C, S), x.dtype),
        grid_spec=pltpu.PrefetchScalarGridSpec(
            num_scalar_prefetch=0,
            grid=(B, nS),
            in_specs=[
                pl.BlockSpec((1, C, 1), lambda b, s: (b, 0, 0)),
                pl.BlockSpec((1, C, tS), lambda b, s: (b, 0, s)),
            ],
            out_specs=pl.BlockSpec((1, C, tS), lambda b, s: (b, 0, s)),
        ),
        compiler_params=pltpu.CompilerParams(
            dimension_semantics=("parallel", "parallel"),
            vmem_limit_bytes=vmem_limit),
        cost_estimate=pl.CostEstimate(
            flops=B * C * S,
            transcendentals=0,
            bytes_accessed=2 * x_bytes + scale_bytes),
    )(scale, x_flat)
    return out_flat.reshape(B, C, D, H, W)


def _reference(x, w1, b1, w2, b2):
    xf = x.astype(jnp.float32)
    y = jnp.mean(xf, axis=(2, 3, 4))                 # (B, C)
    h = y @ w1 + b1
    h = jnp.where(h > 0, h, 0.01 * h)
    s = jax.nn.sigmoid(h @ w2 + b2)                  # (B, C)
    return xf * s[:, :, None, None, None]


if __name__ == "__main__":
    key = jax.random.PRNGKey(0)
    kx, k1, k2, k3, k4, kx2, kx3 = jax.random.split(key, 7)

    B, C, reduction = 2, 32, 16
    Cr = C // reduction

    # PyTorch Linear weight is (out, in); we pass the transposed (in, out)
    # layout so the math is y @ W.
    w1 = jax.random.normal(k1, (C, Cr), dtype=jnp.float32) * 0.1
    b1 = jax.random.normal(k2, (Cr,), dtype=jnp.float32) * 0.1
    w2 = jax.random.normal(k3, (Cr, C), dtype=jnp.float32) * 0.1
    b2 = jax.random.normal(k4, (C,), dtype=jnp.float32) * 0.1

    # Case 1: S = 8*8*8 = 512 (lane-aligned, fused single-pass path).
    x = jax.random.normal(kx, (B, C, 8, 8, 8), dtype=jnp.float32)
    out = jax.block_until_ready(se_layer_3d(x, w1, b1, w2, b2))
    assert out.shape == x.shape
    assert jnp.allclose(out, _reference(x, w1, b1, w2, b2),
                        atol=1e-5, rtol=1e-5), "mismatch (fused, aligned S)"

    # Case 2: S = 7*7*7 = 343 (fused path, non-128-multiple remainder lanes).
    x2 = jax.random.normal(kx2, (B, C, 7, 7, 7), dtype=jnp.float32)
    out2 = jax.block_until_ready(se_layer_3d(x2, w1, b1, w2, b2))
    assert jnp.allclose(out2, _reference(x2, w1, b1, w2, b2),
                        atol=1e-5, rtol=1e-5), "mismatch (fused, ragged S)"

    # Case 3: force the two-pass streaming path with a small tile so the
    # accumulator / masked-partial-last-tile / fori_loop code paths run.
    x3 = jax.random.normal(kx3, (1, C, 28, 28, 28), dtype=jnp.float32)
    out3 = jax.block_until_ready(
        se_layer_3d(x3, w1, b1, w2, b2, force_two_pass=True, tile_bytes=1 << 20))
    assert jnp.allclose(out3, _reference(x3, w1, b1, w2, b2),
                        atol=1e-4, rtol=1e-4), "mismatch (two-pass, ragged S)"

    # Case 4: bf16 I/O variant (f32 accumulation, bf16 load/store).
    x4 = x2.astype(jnp.bfloat16)
    out4 = jax.block_until_ready(se_layer_3d(x4, w1, b1, w2, b2))
    assert out4.dtype == jnp.bfloat16
    assert jnp.allclose(out4.astype(jnp.float32), _reference(x4, w1, b1, w2, b2),
                        atol=5e-2, rtol=5e-2), "mismatch (bf16 I/O)"

    print("KERNEL_OK")
</pallas_src>

<mosaic_0001>
module attributes {stable_mosaic.version = 11 : i64} {
  func.func @_fused_kernel(%arg0: i32, %arg1: memref<1x32x512xf32, #tpu.memory_space<vmem>>, %arg2: memref<32x2xf32, #tpu.memory_space<vmem>>, %arg3: memref<1x2xf32, #tpu.memory_space<vmem>>, %arg4: memref<32x2xf32, #tpu.memory_space<vmem>>, %arg5: memref<32x1xf32, #tpu.memory_space<vmem>>, %arg6: memref<1x32x512xf32, #tpu.memory_space<vmem>>) attributes {dimension_semantics = [#tpu.dimension_semantics<parallel>], iteration_bounds = array<i64: 2>, scalar_prefetch = 0 : i64, scratch_operands = 0 : i64, tpu.core_type = #tpu.core_type<tc>, window_params = [{transform_indices = @transform_0, window_bounds = array<i64: 1, 32, 512>}, {pipeline_mode = #tpu.pipeline_mode<synchronous>, transform_indices = @transform_1, window_bounds = array<i64: 32, 2>}, {pipeline_mode = #tpu.pipeline_mode<synchronous>, transform_indices = @transform_2, window_bounds = array<i64: 1, 2>}, {pipeline_mode = #tpu.pipeline_mode<synchronous>, transform_indices = @transform_3, window_bounds = array<i64: 32, 2>}, {pipeline_mode = #tpu.pipeline_mode<synchronous>, transform_indices = @transform_4, window_bounds = array<i64: 32, 1>}, {transform_indices = @transform_5, window_bounds = array<i64: 1, 32, 512>}]} {
    %cst = arith.constant 0.000000e+00 : f32
    %0 = vector.broadcast %cst : f32 to vector<32x256xf32>
    %c0 = arith.constant 0 : index
    %c0_0 = arith.constant 0 : index
    %c0_1 = arith.constant 0 : index
    %1 = vector.load %arg1[%c0, %c0_0, %c0_1] : memref<1x32x512xf32, #tpu.memory_space<vmem>>, vector<1x32x256xf32>
    %2 = vector.shape_cast %1 : vector<1x32x256xf32> to vector<32x256xf32>
    %3 = arith.addf %0, %2 : vector<32x256xf32>
    %c0_2 = arith.constant 0 : index
    %c0_3 = arith.constant 0 : index
    %c256 = arith.constant 256 : index
    %4 = vector.load %arg1[%c0_2, %c0_3, %c256] : memref<1x32x512xf32, #tpu.memory_space<vmem>>, vector<1x32x256xf32>
    %5 = vector.shape_cast %4 : vector<1x32x256xf32> to vector<32x256xf32>
    %6 = arith.addf %3, %5 : vector<32x256xf32>
    %cst_4 = arith.constant dense<0.000000e+00> : vector<32xf32>
    %7 = vector.multi_reduction <add>, %6, %cst_4 [1] : vector<32x256xf32> to vector<32xf32>
    %8 = vector.shape_cast %7 : vector<32xf32> to vector<32x1xf32>
    %cst_5 = arith.constant 0.001953125 : f32
    %9 = vector.broadcast %cst_5 : f32 to vector<32x1xf32>
    %10 = arith.mulf %8, %9 : vector<32x1xf32>
    %c0_6 = arith.constant 0 : index
    %c0_7 = arith.constant 0 : index
    %11 = vector.load %arg2[%c0_6, %c0_7] : memref<32x2xf32, #tpu.memory_space<vmem>>, vector<32x2xf32>
    %12 = vector.broadcast %10 : vector<32x1xf32> to vector<32x2xf32>
    %13 = arith.mulf %12, %11 : vector<32x2xf32>
    %cst_8 = arith.constant dense<0.000000e+00> : vector<2xf32>
    %14 = vector.multi_reduction <add>, %13, %cst_8 [0] : vector<32x2xf32> to vector<2xf32>
    %15 = vector.shape_cast %14 : vector<2xf32> to vector<1x2xf32>
    %c0_9 = arith.constant 0 : index
    %c0_10 = arith.constant 0 : index
    %16 = vector.load %arg3[%c0_9, %c0_10] : memref<1x2xf32, #tpu.memory_space<vmem>>, vector<1x2xf32>
    %17 = arith.addf %15, %16 : vector<1x2xf32>
    %cst_11 = arith.constant 0.000000e+00 : f32
    %18 = vector.broadcast %cst_11 : f32 to vector<1x2xf32>
    %19 = arith.cmpf ogt, %17, %18 : vector<1x2xf32>
    %cst_12 = arith.constant 0.00999999977 : f32
    %20 = vector.broadcast %cst_12 : f32 to vector<1x2xf32>
    %21 = arith.mulf %20, %17 : vector<1x2xf32>
    %22 = arith.select %19, %17, %21 : vector<1x2xi1>, vector<1x2xf32>
    %c0_13 = arith.constant 0 : index
    %c0_14 = arith.constant 0 : index
    %23 = vector.load %arg4[%c0_13, %c0_14] : memref<32x2xf32, #tpu.memory_space<vmem>>, vector<32x2xf32>
    %24 = vector.broadcast %22 : vector<1x2xf32> to vector<32x2xf32>
    %25 = arith.mulf %24, %23 : vector<32x2xf32>
    %cst_15 = arith.constant dense<0.000000e+00> : vector<32xf32>
    %26 = vector.multi_reduction <add>, %25, %cst_15 [1] : vector<32x2xf32> to vector<32xf32>
    %27 = vector.shape_cast %26 : vector<32xf32> to vector<32x1xf32>
    %c0_16 = arith.constant 0 : index
    %c0_17 = arith.constant 0 : index
    %28 = vector.load %arg5[%c0_16, %c0_17] : memref<32x1xf32, #tpu.memory_space<vmem>>, vector<32x1xf32>
    %29 = arith.addf %27, %28 : vector<32x1xf32>
    %30 = arith.negf %29 : vector<32x1xf32>
    %31 = math.exp %30 : vector<32x1xf32>
    %cst_18 = arith.constant 1.000000e+00 : f32
    %32 = vector.broadcast %cst_18 : f32 to vector<32x1xf32>
    %33 = arith.addf %32, %31 : vector<32x1xf32>
    %34 = arith.divf %32, %33 : vector<32x1xf32>
    %c0_19 = arith.constant 0 : index
    %c0_20 = arith.constant 0 : index
    %c0_21 = arith.constant 0 : index
    %35 = vector.load %arg1[%c0_19, %c0_20, %c0_21] : memref<1x32x512xf32, #tpu.memory_space<vmem>>, vector<1x32x256xf32>
    %36 = vector.shape_cast %35 : vector<1x32x256xf32> to vector<32x256xf32>
    %37 = vector.broadcast %34 : vector<32x1xf32> to vector<32x256xf32>
    %38 = arith.mulf %36, %37 : vector<32x256xf32>
    %c0_22 = arith.constant 0 : index
    %c0_23 = arith.constant 0 : index
    %c0_24 = arith.constant 0 : index
    %39 = vector.load %arg6[%c0_22, %c0_23, %c0_24] : memref<1x32x512xf32, #tpu.memory_space<vmem>>, vector<1x32x256xf32>
    %40 = vector.shape_cast %39 : vector<1x32x256xf32> to vector<32x256xf32>
    %41 = vector.shape_cast %38 : vector<32x256xf32> to vector<1x32x256xf32>
    tpu.vector_store %arg6[%c0_22, %c0_23, %c0_24], %41 {strides = array<i32>} : memref<1x32x512xf32, #tpu.memory_space<vmem>>, vector<1x32x256xf32>,
    %c0_25 = arith.constant 0 : index
    %c0_26 = arith.constant 0 : index
    %c256_27 = arith.constant 256 : index
    %42 = vector.load %arg1[%c0_25, %c0_26, %c256_27] : memref<1x32x512xf32, #tpu.memory_space<vmem>>, vector<1x32x256xf32>
    %43 = vector.shape_cast %42 : vector<1x32x256xf32> to vector<32x256xf32>
    %44 = vector.broadcast %34 : vector<32x1xf32> to vector<32x256xf32>
    %45 = arith.mulf %43, %44 : vector<32x256xf32>
    %c0_28 = arith.constant 0 : index
    %c0_29 = arith.constant 0 : index
    %c256_30 = arith.constant 256 : index
    %46 = vector.load %arg6[%c0_28, %c0_29, %c256_30] : memref<1x32x512xf32, #tpu.memory_space<vmem>>, vector<1x32x256xf32>
    %47 = vector.shape_cast %46 : vector<1x32x256xf32> to vector<32x256xf32>
    %48 = vector.shape_cast %45 : vector<32x256xf32> to vector<1x32x256xf32>
    tpu.vector_store %arg6[%c0_28, %c0_29, %c256_30], %48 {strides = array<i32>} : memref<1x32x512xf32, #tpu.memory_space<vmem>>, vector<1x32x256xf32>,
    return
  }
  func.func @transform_0(%arg0: i32) -> (i32, i32, i32) {
    %c0_i32 = arith.constant 0 : i32
    %c0_i32_0 = arith.constant 0 : i32
    %c0_i32_1 = arith.constant 0 : i32
    return %arg0, %c0_i32, %c0_i32_0 : i32, i32, i32
  }
  func.func @transform_1(%arg0: i32) -> (i32, i32) {
    %c0_i32 = arith.constant 0 : i32
    %c0_i32_0 = arith.constant 0 : i32
    %c0_i32_1 = arith.constant 0 : i32
    return %c0_i32, %c0_i32_0 : i32, i32
  }
  func.func @transform_2(%arg0: i32) -> (i32, i32) {
    %c0_i32 = arith.constant 0 : i32
    %c0_i32_0 = arith.constant 0 : i32
    %c0_i32_1 = arith.constant 0 : i32
    return %c0_i32, %c0_i32_0 : i32, i32
  }
  func.func @transform_3(%arg0: i32) -> (i32, i32) {
    %c0_i32 = arith.constant 0 : i32
    %c0_i32_0 = arith.constant 0 : i32
    %c0_i32_1 = arith.constant 0 : i32
    return %c0_i32, %c0_i32_0 : i32, i32
  }
  func.func @transform_4(%arg0: i32) -> (i32, i32) {
    %c0_i32 = arith.constant 0 : i32
    %c0_i32_0 = arith.constant 0 : i32
    %c0_i32_1 = arith.constant 0 : i32
    return %c0_i32, %c0_i32_0 : i32, i32
  }
  func.func @transform_5(%arg0: i32) -> (i32, i32, i32) {
    %c0_i32 = arith.constant 0 : i32
    %c0_i32_0 = arith.constant 0 : i32
    %c0_i32_1 = arith.constant 0 : i32
    return %arg0, %c0_i32, %c0_i32_0 : i32, i32, i32
  }
}

</mosaic_0001>

<bundles_post_ra>
// kernel: tpu_custom_call.1
= control target key start
LH: loop header
LB: loop body
LE: loop exit
PB: predicated region body
PF: predicated region fallthrough
CT: control target
= control target key end

     0   :  { %10 = vsyncpa [#allocation3], 0  ;;  %s1022_s0 = inlined_call_operand.hbm [shape: f32[2,32,512], index: 0, kind: input, shape index: {}]   ;;  %s1023_s1 = inlined_call_operand.vmem [shape: f32[32,2], index: 1, kind: input, shape index: {}]   ;;  %s1024_s2 = inlined_call_operand.vmem [shape: f32[1,2], index: 2, kind: input, shape index: {}]   ;;  %s1025_s3 = inlined_call_operand.vmem [shape: f32[32,2], index: 3, kind: input, shape index: {}]   ;;  %s1026_s4 = inlined_call_operand.vmem [shape: f32[32,1], index: 4, kind: input, shape index: {}]   ;;  %s1027_s5 = inlined_call_operand.hbm [shape: f32[2,32,512], index: 5, kind: output, shape index: {}]  }
   0x1   :  { %12 = vsyncpa [#allocation3 + $0x1], 0 }
   0x2   :  { %13 = vsyncpa [#allocation4], 0 }
   0x3   :  { %15 = vsyncpa [#allocation4 + $0x1], 0  ;;  %s745_s18 = smov 0   ;;  %s747_s19 = smov 0  }
   0x4   :  { %s749_s20 = smov 0   ;;  %s751_s21 = smov 0  }
   0x5 LB: > { %s766_s22 = sadd.s32 4294967295, %s706_s21   ;;  %s521_s23 = sadd.s32 4294967294, %s706_s21   ;;  %s706_s21 = sphi %s751_s21, %s1040_s21   ;;  %s702_s20 = sphi %s749_s20, %s1039_s20   ;;  %s698_s19 = sphi %s747_s19, %s1038_s19   ;;  %s694_s18 = sphi %s745_s18, %s1037_s18  }
   0x6   : > { %s770_s24 = sadd.s32 1, %s706_s21   ;;  %s28_s25 = sadd.s32 1, %s702_s20 }
   0x7   : > { %s25_s26 = ssub.s32 %s706_s21, %s770_s24  ;;  %p35_p0 = scmp.ne.s32.totalorder %s702_s20, %s698_s19 }
   0x8   : > { %p26_p1 = scmp.eq.s32.totalorder %s25_s26, 0  ;;  %p36_p2 = scmp.eq.s32.totalorder %s706_s21, 0 }
   0x9   : > { %p41_p3 = scmp.ne.s32.totalorder %s698_s19, %s694_s18  ;;  %p42_p4 = scmp.eq.s32.totalorder %s766_s22, 0 }
   0xa   : > { %s782_s27 = scalar_select %p26_p1, %s702_s20, %s28_s25  }
   0xb   : > { %p784_p5 = por %p36_p2, %p35_p0  ;;  %p788_p6 = por %p42_p4, %p41_p3 }
   0xc   : > { %p149_p7 = scmp.eq.s32.totalorder %s766_s22, 1  ;;  %p155_p8 = scmp.eq.s32.totalorder %s521_s23, 1 }
   0xd   : > { %p553_p10 = scmp.lt.s32.totalorder %s706_s21, 2  ;;  %s187_s7 = sand.u32 1, %s702_s20  }
   0xe   : > { %p795_p11 = por %p149_p7, %p35_p0  ;;  %p799_p12 = por %p155_p8, %p41_p3 }
   0xf   : > { %s539_s8 = sshll.u32 %s706_s21, 11  ;;  %s524_s9 = sshll.u32 %s187_s7, 7 }
  0x10   : > { %s1031_s30 = scalar_select %p795_p11, 1, 0 }
  0x11   : > { %s1032_s6 = scalar_select %p799_p12, 1, 0 }
  0x12   : > { %s808_s12 = scalar_lea.hbm %s1022_s0, %s539_s8  ;;  %s191_s13 = scalar_lea.vmem [#allocation2], %s524_s9 }
  0x13   : > { %s198_s14 = sshll.u32 %s191_s13, 4  ;;  %p812_p13 = pnand %p553_p10, %p784_p5  ;;  %s816_s14 = int_to_ptr.vmem [resolvable:$true] %s198_s14 }
  0x14   : > { %s818_s16 = scalar_lea.sflag [#allocation3], %s187_s7  ;;  %s610_s17 = scalar_lea.hbm %s808_s12, 2048 }
  0x15   : > { %p611_p0 = scmp.ne.s32.totalorder %s808_s12, %s610_s17  ;;  %p612_p1 = pneg %p812_p13 }
  0x16   : > { %s615_s26 = scalar_lea.hbm %s1022_s0, 4096  ;;  %p616_p4 = scmp.lt.u32.totalorder %s808_s12, %s1022_s0 }
  0x17   : > { %p613_p2 = pnand %p612_p1, %p611_p0  ;;  %p617_p5 = scmp.lt.u32.totalorder %s615_s26, %s610_s17 }
  0x18   : > { %p619_p8 = scmp.lt.u32.totalorder %s610_s17, %s808_s12 }
  0x19   : > { %p614_p3 = pneg %p613_p2  ;;  %p618_p7 = por %p617_p5, %p616_p4 }
  0x1b   : > { %p620_p10 = por %p619_p8, %p618_p7 }
  0x1d   : > { %p621_p9 = pnand %p620_p10, %p614_p3 }
  0x1f   : > { %624 = shalt.err (!%p621_p9)
}
  0x20   : > { %s625_s7 = scalar_lea.vmem %s816_s14, 2048  ;;  %s708_s9 = smov [#allocation2]  }
  0x21   : > { %p626_p0 = scmp.ne.s32.totalorder %s816_s14, %s625_s7  ;;  %s630_s10 = sshll.u32 %s708_s9, 4  ;;  %s631_s10 = int_to_ptr.vmem [resolvable:$false] %s630_s10 }
  0x22   : > { %s632_s11 = scalar_lea.vmem %s631_s10, 4096  ;;  %p633_p11 = scmp.lt.s32.totalorder %s816_s14, %s631_s10 }
  0x23   : > { %p628_p2 = pnand %p626_p0, %p612_p1  ;;  %p634_p4 = scmp.lt.s32.totalorder %s632_s11, %s625_s7 }
  0x25   : > { %p629_p12 = pneg %p628_p2  ;;  %p635_p5 = por %p634_p4, %p633_p11 }
  0x27   : > { %p636_p7 = pnand %p635_p5, %p629_p12 }
  0x29   : > { %639 = shalt.err (!%p636_p7)
}
  0x2a   : > { %s709_s13 = smov 512   ;;  %s710_s17 = smov 32  }
  0x2b   : > { %548 = dma.hbm_to_vmem [thread:$0]  (!%p812_p13), %s808_s12, 2048, %s816_s14, %s818_s16, %s709_s13, %s709_s13, %s710_s17  }
  0x2c   : > { %p527_p9 = scmp.ge.s32.totalorder %s706_s21, 1  ;;  %p206_p1 = scmp.lt.s32.totalorder %s706_s21, 3 }
  0x2e   : > { %p207_p3 = pnand %p527_p9, %p206_p1 }
  0x2f   : > { %s849_s23 = sand.u32 (!%p207_p3), 1, %s698_s19  }
  0x30   : > { %210 = sbr.rel (%p207_p3) target bundleno = 566 (0x236), region = 40  ;;  %s528_s25 = sshll.u32 (!%p207_p3), %s849_s23, 7 }
  0x31   : > { %s213_s26 = scalar_lea.sflag (!%p207_p3), [#allocation3], %s849_s23  ;;  %s216_s28 = scalar_lea.vmem (!%p207_p3), [#allocation2], %s528_s25 }
  0x37   : > { %685 = dma.done.wait (%p788_p6), %s213_s26, 2048  }
  0x38   : > { %687 = vsyncadd (%p788_p6), %s213_s26, 4294965248  ;;  %v859_v0 = vld [vmem:[%s216_s28] sm:$0xff]  ;;  %v861_v1 = vld [vmem:[%s216_s28 + $0x8] sm:$0xff]  ;;  %vm299_vm0 = vcmask 15360   ;;  %v322_v54 = vlaneseq  ;;  %s242_s26 = scalar_lea.vmem [#allocation5], %s528_s25  ;;  %p1034_p11 = scmp.ne.s32.totalorder %s1031_s30, 0 }
  0x39   : > { %v863_v2 = vld [vmem:[%s216_s28 + $0x10] sm:$0xff]  ;;  %v865_v3 = vld [vmem:[%s216_s28 + $0x18] sm:$0xff]  ;;  %v869_v5 = vld [vmem:[%s216_s28 + $0x40] sm:$0xff]  ;;  %s448_s29 = sshll.u32 %s242_s26, 4  ;;  %s712_s16 = smov [#allocation5]   ;;  %s974_s29 = int_to_ptr.vmem [resolvable:$true] %s448_s29 }
  0x3a   : > { %v267_v4 = vadd.f32 %v863_v2, %v859_v0  ;;  %v871_v6 = vld [vmem:[%s216_s28 + $0x48] sm:$0xff]  ;;  %v268_v7 = vadd.f32 %v865_v3, %v861_v1  ;;  %v875_v8 = vld [vmem:[%s216_s28 + $0x50] sm:$0xff]  ;;  %v877_v9 = vld [vmem:[%s216_s28 + $0x58] sm:$0xff]  ;;  %v323_v58 = vshrl.u32 %v322_v54, 7  ;;  %s640_s15 = scalar_lea.vmem %s974_s29, 2048  ;;  %s644_s8 = sshll.u32 %s712_s16, 4  ;;  %s645_s8 = int_to_ptr.vmem [resolvable:$false] %s644_s8 }
  0x3b   : > { %v879_v10 = vld [vmem:[%s216_s28 + $0x20] sm:$0xff]  ;;  %v271_v11 = vadd.f32 %v875_v8, %v869_v5  ;;  %v272_v12 = vadd.f32 %v877_v9, %v871_v6  ;;  %v885_v13 = vld [vmem:[%s216_s28 + $0x28] sm:$0xff]  ;;  %v887_v14 = vld [vmem:[%s216_s28 + $0x30] sm:$0xff]  ;;  %p641_p6 = scmp.ne.s32.totalorder %s974_s29, %s640_s15  ;;  %s646_s7 = scalar_lea.vmem %s645_s8, 4096 }
  0x3c   : > { %v889_v15 = vld [vmem:[%s216_s28 + $0x38] sm:$0xff]  ;;  %v275_v16 = vadd.f32 %v268_v7, %v267_v4  ;;  %v269_v17 = vadd.f32 %v887_v14, %v879_v10  ;;  %v895_v19 = vld [vmem:[%s216_s28 + $0x60] sm:$0xff]  ;;  %v897_v20 = vld [vmem:[%s216_s28 + $0x68] sm:$0xff]  ;;  %v324_v61 = vsub.s32 0, %v323_v58  ;;  %p647_p8 = scmp.lt.s32.totalorder %s974_s29, %s645_s8  ;;  %p648_p10 = scmp.lt.s32.totalorder %s646_s7, %s640_s15 }
  0x3d   : > { %v270_v18 = vadd.f32 %v889_v15, %v885_v13  ;;  %v899_v21 = vld [vmem:[%s216_s28 + $0x70] sm:$0xff]  ;;  %v281_v22 = vadd.f32 %v272_v12, %v271_v11  ;;  %v901_v23 = vld [vmem:[%s216_s28 + $0x78] sm:$0xff]  ;;  %v291_v31 = vld [vmem:[%s1023_s1] sm:$0xff]  ;;  %s540_s28 = sshll.u32 %s766_s22, 11  ;;  %s435_s22 = scalar_lea.sflag [#allocation4], %s849_s23 }
  0x3e   : > { %v273_v24 = vadd.f32 %v899_v21, %v895_v19  ;;  %276 = vadd.xlane.f32.xlu0 %v275_v16  ;;  %v274_v26 = vadd.f32 %v901_v23, %v897_v20  ;;  %v293_v33 = vld [vmem:[%s1023_s1 + $0x10] sm:$0xff]  ;;  %v292_v34 = vld [vmem:[%s1023_s1 + $0x8] sm:$0xff]  ;;  %v294_v38 = vld [vmem:[%s1023_s1 + $0x18] sm:$0xff]  ;;  %s972_s14 = scalar_lea.hbm %s1027_s5, %s540_s28  ;;  %p642_p12 = pnand %p641_p6, %p1034_p11 }
  0x3f   : > { %v278_v25 = vadd.f32 %v270_v18, %v269_v17  ;;  %282 = vadd.xlane.f32.xlu1 %v281_v22  ;;  %v313_v57 = vld [vmem:[%s1024_s2] sm:$0x1]  ;;  %v319_v4 = vld [vmem:[%s1025_s3 + $0x8] sm:$0xff]  ;;  %v321_v12 = vld [vmem:[%s1025_s3 + $0x18] sm:$0xff]  ;;  %p649_p0 = por %p648_p10, %p647_p8 }
  0x40   : > { %v284_v27 = vadd.f32 %v274_v26, %v273_v24  ;;  %v318_v7 = vld [vmem:[%s1025_s3] sm:$0xff]  ;;  %v320_v16 = vld [vmem:[%s1025_s3 + $0x10] sm:$0xff]  ;;  %p643_p13 = pneg %p642_p12 }
  0x42   : > { %279 = vadd.xlane.f32.xlu0 %v278_v25  ;;  %p650_p2 = pnand %p649_p0, %p643_p13 }
  0x43   : > { %285 = vadd.xlane.f32.xlu1 %v284_v27 }
  0xcb   : > { %v277_v28 = vpop.xlane.xlu0 %276 }
  0xcc   : > { %v287_v29 = vmul.f32 0.001953125, %v277_v28  ;;  %v283_v30 = vpop.xlane.xlu1 %282 }
  0xcd   : > { %v289_v32 = vmul.f32 0.001953125, %v283_v30  ;;  %v343_v30 = vld [vmem:[%s1026_s4 + $0x8] sm:$0xff] }
  0xce   : > { %v295_v36 = vmul.f32 %v291_v31, %v287_v29  ;;  %v711_v29 = vmov 0   ;;  %v342_v31 = vld [vmem:[%s1026_s4] sm:$0xff] }
  0xcf   : > { %v280_v35 = vpop.xlane.xlu0 %279  ;;  %v297_v41 = vmul.f32 %v293_v33, %v289_v32  ;;  %593 = vset.pattern.permute.xlu1 %v711_v29  ;;  %592 = vset.pattern.permute.xlu0 %v711_v29 }
  0xd0   : > { %v288_v37 = vmul.f32 0.001953125, %v280_v35  ;;  %v286_v39 = vpop.xlane.xlu1 %285  ;;  %v300_v44 = vsel %vm299_vm0, %v295_v36, 0.0  ;;  %v345_v36 = vld [vmem:[%s1026_s4 + $0x18] sm:$0xff] }
  0xd1   : > { %v290_v40 = vmul.f32 0.001953125, %v286_v39  ;;  %v303_v47 = vsel %vm299_vm0, %v297_v41, 0.0 }
  0xd2   : > { %v296_v42 = vmul.f32 %v292_v34, %v288_v37  ;;  %v344_v37 = vld [vmem:[%s1026_s4 + $0x10] sm:$0xff] }
  0xd3   : > { %v298_v43 = vmul.f32 %v294_v38, %v290_v40 }
  0xd4   : > { %v301_v45 = vsel %vm299_vm0, %v296_v42, 0.0 }
  0xd5   : > { %v302_v46 = vadd.f32 %v301_v45, %v300_v44  ;;  %v305_v48 = vsel %vm299_vm0, %v298_v43, 0.0 }
  0xd7   : > { %v304_v49 = vadd.f32 %v303_v47, %v302_v46 }
  0xd9   : > { %v306_v50 = vadd.f32 %v305_v48, %v304_v49 }
  0xdb   : > { %v307_v51 = vrot.slane %v306_v50, 4 }
  0xdd   : > { %v308_v52 = vadd.f32 %v307_v51, %v306_v50 }
  0xdf   : > { %v309_v53 = vrot.slane %v308_v52, 2 }
  0xe1   : > { %v310_v55 = vadd.f32 %v309_v53, %v308_v52 }
  0xe3   : > { %v311_v56 = vrot.slane %v310_v55, 1 }
  0xe5   : > { %v312_v59 = vadd.f32 %v311_v56, %v310_v55 }
  0xe7   : > { %v314_v60 = vadd.f32 %v313_v57, %v312_v59 }
  0xe9   : > { %vm315_vm1 = vcmp.gt.f32.partialorder %v314_v60, 0.0  ;;  %v316_v62 = vmul.f32 0.01, %v314_v60 }
  0xeb   : > { %v317_v63 = vsel %vm315_vm1, %v314_v60, %v316_v62 }
  0xec   : > { %v325_v11 = vrot.slane %v317_v63, %v324_v61 }
  0xee   : > { %v327_v17 = vmul.f32 %v325_v11, %v319_v4  ;;  %v326_v18 = vmul.f32 %v325_v11, %v318_v7  ;;  %v329_v25 = vmul.f32 %v325_v11, %v321_v12  ;;  %v328_v26 = vmul.f32 %v325_v11, %v320_v16 }
  0xf0   : > { %v333_v22 = vsel %vm299_vm0, %v327_v17, 0.0  ;;  %v330_v24 = vsel %vm299_vm0, %v326_v18, 0.0  ;;  %v339_v27 = vsel %vm299_vm0, %v329_v25, 0.0  ;;  %v336_v28 = vsel %vm299_vm0, %v328_v26, 0.0 }
  0xf1   : > { %334 = vadd.xlane.f32.xlu1 %v333_v22  ;;  %331 = vadd.xlane.f32.xlu0 %v330_v24 }
  0xf5   : > { %340 = vadd.xlane.f32.xlu1 %v339_v27  ;;  %337 = vadd.xlane.f32.xlu0 %v336_v28 }
 0x17e   : > { %v335_v32 = vpop.xlane.xlu1 %334  ;;  %v332_v33 = vpop.xlane.xlu0 %331 }
 0x17f   : > { %v347_v34 = vadd.f32 %v343_v30, %v335_v32  ;;  %v346_v35 = vadd.f32 %v342_v31, %v332_v33 }
 0x181   : > { %v531_v38 = vmul.f32 -1.442695, %v347_v34  ;;  %v530_v39 = vmul.f32 -1.442695, %v346_v35 }
 0x182   : > { %v341_v40 = vpop.xlane.xlu1 %340  ;;  %v338_v41 = vpop.xlane.xlu0 %337 }
 0x183   : > { %594 = vpow2.f32 %v531_v38  ;;  %v349_v42 = vadd.f32 %v345_v36, %v341_v40  ;;  %v348_v43 = vadd.f32 %v344_v37, %v338_v41 }
 0x184   : > { %596 = vpow2.f32 %v530_v39 }
 0x185   : > { %v533_v44 = vmul.f32 -1.442695, %v349_v42  ;;  %v532_v45 = vmul.f32 -1.442695, %v348_v43 }
 0x187   : > { %598 = vpow2.f32 %v533_v44 }
 0x188   : > { %600 = vpow2.f32 %v532_v45 }
 0x18d   : > { %v595_v46 = vpop.eup %594 }
 0x18e   : > { %v597_v47 = vpop.eup %596  ;;  %v363_v48 = vadd.f32 1.0, %v595_v46 }
 0x18f   : > { %v362_v49 = vadd.f32 1.0, %v597_v47 }
 0x190   : > { %602 = vrcp.f32 %v363_v48 }
 0x191   : > { %v599_v50 = vpop.eup %598  ;;  %604 = vrcp.f32 %v362_v49 }
 0x192   : > { %v601_v51 = vpop.eup %600  ;;  %v365_v53 = vadd.f32 1.0, %v599_v50 }
 0x193   : > { %v364_v52 = vadd.f32 1.0, %v601_v51 }
 0x195   : > { %606 = vrcp.f32 %v364_v52 }
 0x196   : > { %608 = vrcp.f32 %v365_v53 }
 0x19a   : > { %v603_v54 = vpop.eup %602 }
 0x19b   : > { %v605_v55 = vpop.eup %604  ;;  %381 = vperm.xlu1 %593, %v603_v54  }
 0x19c   : > { %376 = vperm.xlu0 %592, %v605_v55  }
 0x19f   : > { %v607_v56 = vpop.eup %606 }
 0x1a0   : > { %386 = vperm.xlu1 %593, %v607_v56   ;;  %v609_v57 = vpop.eup %608 }
 0x1a4   : > { %391 = vperm.xlu1 %593, %v609_v57  }
 0x21a   : > { %v382_v58 = vpop.permute.xlu1 %381 }
 0x21b   : > { %v396_v59 = vmul.f32 %v382_v58, %v879_v10  ;;  %v397_v60 = vmul.f32 %v382_v58, %v885_v13  ;;  %v420_v61 = vmul.f32 %v382_v58, %v887_v14  ;;  %v421_v62 = vmul.f32 %v382_v58, %v889_v15  ;;  %v377_v63 = vpop.permute.xlu0 %376 }
 0x21c   : > { %v394_v4 = vmul.f32 %v377_v63, %v859_v0  ;;  %v395_v7 = vmul.f32 %v377_v63, %v861_v1  ;;  %v418_v11 = vmul.f32 %v377_v63, %v863_v2  ;;  %v419_v12 = vmul.f32 %v377_v63, %v865_v3 }
 0x21d   : > { %404 = vst [vmem:[%s242_s26 + $0x20] sm:$0xff] %v396_v59  ;;  %405 = vst [vmem:[%s242_s26 + $0x28] sm:$0xff] %v397_v60 }
 0x21e   : > { %428 = vst [vmem:[%s242_s26 + $0x30] sm:$0xff] %v420_v61  ;;  %429 = vst [vmem:[%s242_s26 + $0x38] sm:$0xff] %v421_v62 }
 0x21f   : > { %402 = vst [vmem:[%s242_s26] sm:$0xff] %v394_v4  ;;  %403 = vst [vmem:[%s242_s26 + $0x8] sm:$0xff] %v395_v7  ;;  %v387_v10 = vpop.permute.xlu1 %386 }
 0x220   : > { %426 = vst [vmem:[%s242_s26 + $0x10] sm:$0xff] %v418_v11  ;;  %427 = vst [vmem:[%s242_s26 + $0x18] sm:$0xff] %v419_v12  ;;  %v398_v0 = vmul.f32 %v387_v10, %v869_v5  ;;  %v399_v1 = vmul.f32 %v387_v10, %v871_v6  ;;  %v422_v2 = vmul.f32 %v387_v10, %v875_v8 }
 0x221   : > { %v423_v13 = vmul.f32 %v387_v10, %v877_v9 }
 0x222   : > { %406 = vst [vmem:[%s242_s26 + $0x40] sm:$0xff] %v398_v0  ;;  %407 = vst [vmem:[%s242_s26 + $0x48] sm:$0xff] %v399_v1 }
 0x223   : > { %430 = vst [vmem:[%s242_s26 + $0x50] sm:$0xff] %v422_v2  ;;  %431 = vst [vmem:[%s242_s26 + $0x58] sm:$0xff] %v423_v13  ;;  %v392_v3 = vpop.permute.xlu1 %391 }
 0x224   : > { %v400_v5 = vmul.f32 %v392_v3, %v895_v19  ;;  %v401_v6 = vmul.f32 %v392_v3, %v897_v20  ;;  %v424_v8 = vmul.f32 %v392_v3, %v899_v21  ;;  %v425_v9 = vmul.f32 %v392_v3, %v901_v23 }
 0x226   : > { %408 = vst [vmem:[%s242_s26 + $0x60] sm:$0xff] %v400_v5  ;;  %409 = vst [vmem:[%s242_s26 + $0x68] sm:$0xff] %v401_v6 }
 0x227   : > { %432 = vst [vmem:[%s242_s26 + $0x70] sm:$0xff] %v424_v8  ;;  %433 = vst [vmem:[%s242_s26 + $0x78] sm:$0xff] %v425_v9 }
 0x228   : > { %653 = shalt.err (!%p650_p2)
}
 0x229   : > { %s654_s9 = scalar_lea.hbm %s972_s14, 2048  ;;  %s658_s13 = scalar_lea.hbm %s1027_s5, 4096 }
 0x22a   : > { %p655_p4 = scmp.ne.s32.totalorder %s972_s14, %s654_s9  ;;  %p659_p9 = scmp.lt.u32.totalorder %s972_s14, %s1027_s5 }
 0x22b   : > { %p660_p1 = scmp.lt.u32.totalorder %s658_s13, %s654_s9  ;;  %p662_p6 = scmp.lt.u32.totalorder %s654_s9, %s972_s14 }
 0x22c   : > { %p656_p5 = pnand %p655_p4, %p1034_p11 }
 0x22d   : > { %p661_p3 = por %p660_p1, %p659_p9 }
 0x22e   : > { %p657_p7 = pneg %p656_p5 }
 0x22f   : > { %p663_p12 = por %p662_p6, %p661_p3 }
 0x231   : > { %p664_p13 = pnand %p663_p12, %p657_p7 }
 0x233   : > { %667 = shalt.err (!%p664_p13)
}
 0x234   : > { %s713_s28 = smov 512   ;;  %s714_s25 = smov 32  }
 0x235   : > { %543 = dma.vmem_to_hbm [thread:$0]  (%p1034_p11), %s974_s29, 2048, %s972_s14, %s435_s22, %s713_s28, %s713_s28, %s714_s25  }
 0x236 PF: > { %s463_s12 = sand.u32 1, %s694_s18   ;;  %p1035_p8 = scmp.ne.s32.totalorder %s1032_s6, 0 }
 0x237   : > { %p1036_p10 = scmp.ge.s32.totalorder %s706_s21, 2  ;;  %s464_s15 = scalar_lea.sflag [#allocation4], %s463_s12 }
 0x239   : > { %p550_p0 = pnand %p1036_p10, %p1035_p8 }
 0x23b   : > { %689 = dma.done.wait (!%p550_p0), %s464_s15, 2048  }
 0x23c   : > { %691 = vsyncadd (!%p550_p0), %s464_s15, 4294965248  ;;  %p18_p2 = scmp.ge.s32.totalorder %s770_s24, 4   ;;  %s1037_s18 = smov %s698_s19 }
 0x23d   : > { %s1038_s19 = smov %s702_s20  ;;  %s1039_s20 = smov %s782_s27 }
 0x23e   : > { %s1040_s21 = smov %s770_s24  ;;  %20 = sbr.rel (!%p18_p2) target bundleno = 5 (0x5), region = 85 }
 0x245   :  { %469 = vsyncpa [#allocation3], 1 }
 0x246   :  { %471 = vsyncpa [#allocation3 + $0x1], 1 }
 0x247   :  { %472 = vsyncpa [#allocation4], 1 }
 0x248   :  { %474 = vsyncpa [#allocation4 + $0x1], 1 }

</bundles_post_ra>
